<compile_context>
chip_gen: v6e
topology: v6e:2x2x1
jax: 0.10.0
libtpu: 0.0.40
codegen_flags: <defaults>
</compile_context>

<pallas_src>
import numpy as np
import jax
import jax.numpy as jnp
from jax import lax
from jax.experimental import pallas as pl
from jax.experimental.pallas import tpu as pltpu

_LANES = 128  # points processed per in-kernel chunk == one full lane group


def _compute_freqs(n_freqs, log_sampling, freq_scale):
    """Frequency buffer, matching PosEmbedder.__init__."""
    if n_freqs <= 0:
        return np.zeros((0,), np.float32)
    max_freq = n_freqs - 1
    if log_sampling:
        freqs = 2.0 ** np.linspace(0.0, max_freq, n_freqs, dtype=np.float32)
    else:
        freqs = np.linspace(1.0, 2.0 ** max_freq, n_freqs, dtype=np.float32)
    return (np.float32(freq_scale) * freqs).astype(np.float32)


def _build_tables(freqs, include_input, in_dim, out_dim):
    """Constant matrices encoding the embedding in output-channel-row order.

    For the channel-major (h, 128) tile of one 128-point chunk:
        row r = sum_d x_d * EH[d, r]                       (identity rows)
              + sin(sum_d x_d * CC[d, r] + PH[r])          (trig rows)
    Rows with all-zero coefficients evaluate to sin(0) = 0 and are sliced off.
    """
    n_freqs = len(freqs)
    base = in_dim if include_input else 0
    h = ((out_dim + 7) // 8) * 8          # sublane-aligned channel height
    hd = ((in_dim + 7) // 8) * 8          # identity-row region height

    cc = np.zeros((in_dim, h, _LANES), np.float32)
    ph = np.zeros((h, _LANES), np.float32)
    for k in range(n_freqs):
        for t, phase in enumerate((0.0, np.pi / 2.0)):     # sin row, cos row
            for d in range(in_dim):
                r = base + (2 * k + t) * in_dim + d
                cc[d, r, :] = freqs[k]
                ph[r, :] = phase
    eh = np.zeros((in_dim, hd, _LANES), np.float32)
    if include_input:
        for d in range(in_dim):
            eh[d, d, :] = 1.0
    return cc, ph, eh, h, hd


def _make_kernel(include_input, in_dim, out_dim, h, hd):
    """Kernel: xt (in_dim, bn) channel-major in -> o (bn, out_dim) out."""
    pad_rows = _LANES - h

    def kernel(cc_ref, ph_ref, eh_ref, xt_ref, o_ref):
        bn = o_ref.shape[0]
        n_chunks = bn // _LANES

        def chunk(c, carry):
            idx = pl.multiple_of(c * _LANES, _LANES)
            xc = xt_ref[:, pl.ds(idx, _LANES)].astype(jnp.float32)  # (in_dim,128)

            # Lane-dense angle construction: arg[r, n] = f(r)*x_{d(r),n} + ph(r)
            arg = ph_ref[...]                                       # (h, 128)
            head = None
            for d in range(in_dim):                                 # tiny static loop
                xrow = xc[d:d + 1, :]                               # (1, 128)
                arg = arg + jnp.broadcast_to(xrow, (h, _LANES)) * cc_ref[d]
                if include_input:
                    hp = jnp.broadcast_to(xrow, (hd, _LANES)) * eh_ref[d]
                    head = hp if head is None else head + hp

            vals = jnp.sin(arg)                                     # ONE EUP batch
            if include_input:
                if hd < h:
                    vals = jnp.concatenate([vals[:hd] + head, vals[hd:]], axis=0)
                else:
                    vals = vals + head
            if pad_rows:
                vals = jnp.concatenate(
                    [vals, jnp.zeros((pad_rows, _LANES), jnp.float32)], axis=0)

            # Fused layout swap: channel-major -> point-major, square XLU transpose.
            t = jnp.transpose(vals, (1, 0))                         # (128, 128)
            o_ref[pl.ds(idx, _LANES), :] = t[:, :out_dim].astype(o_ref.dtype)
            return carry

        lax.fori_loop(0, n_chunks, chunk, 0)

    return kernel


def pos_embed(x, *, in_dim=3, include_input=True, n_freqs=6, log_sampling=True,
              freq_scale=1, block_n=32768, out_dtype=jnp.float32):
    """Fourier feature embedding of x[..., in_dim] -> [..., out_dim]."""
    assert x.shape[-1] == in_dim
    out_dim = (in_dim if include_input else 0) + 2 * n_freqs * in_dim
    # TODO(synk): out_dim > 128 would need multiple transpose groups per chunk.
    assert 0 < out_dim <= _LANES
    orig_shape = x.shape

    x2d = x.reshape(-1, in_dim)
    n = x2d.shape[0]
    assert n >= 1
    # Channel-major (in_dim, N) feed: one small pass over the *input* so all
    # in-kernel compute runs lane-dense; the 13x larger output is written
    # directly in its final (N, out_dim) layout by the kernel.
    xt = x2d.T

    freqs = _compute_freqs(n_freqs, log_sampling, freq_scale)
    cc, ph, eh, h, hd = _build_tables(freqs, include_input, in_dim, out_dim)
    const_bytes = (cc.size + ph.size + eh.size) * 4
    in_rows = ((in_dim + 7) // 8) * 8
    out_isz = jnp.dtype(out_dtype).itemsize
    in_isz = jnp.dtype(x.dtype).itemsize

    n_pad = ((n + _LANES - 1) // _LANES) * _LANES
    bn = max(_LANES, min((block_n // _LANES) * _LANES, n_pad))

    # Re-derive the tile budget against VMEM (output tile is lane-padded to 128
    # lanes, input tile sublane-padded to 8 rows, both double-buffered).  Keep
    # the request under 48 MiB so it also fits v7x's 64 MiB physical VMEM.
    vmem_budget = 48 << 20

    def working_set(b):
        return 2 * (b * _LANES * out_isz + in_rows * b * in_isz + const_bytes) \
            + (8 << 20)

    while bn > _LANES and working_set(bn) > vmem_budget:
        bn = max(_LANES, ((bn // 2 + _LANES - 1) // _LANES) * _LANES)

    # Keep >= 2 grid steps when possible so the "parallel" axis can shard
    # across both TensorCores on v7x megacore.
    if n_pad >= 2 * _LANES and pl.cdiv(n, bn) < 2:
        bn = max(_LANES, ((n_pad // 2 + _LANES - 1) // _LANES) * _LANES)

    grid = (pl.cdiv(n, bn),)
    kernel = _make_kernel(include_input, in_dim, out_dim, h, hd)

    out = pl.pallas_call(
        kernel,
        out_shape=jax.ShapeDtypeStruct((n, out_dim), out_dtype),
        grid=grid,
        in_specs=[
            pl.BlockSpec((in_dim, h, _LANES), lambda i: (0, 0, 0)),   # CC
            pl.BlockSpec((h, _LANES), lambda i: (0, 0)),              # PH
            pl.BlockSpec((in_dim, hd, _LANES), lambda i: (0, 0, 0)),  # EH
            pl.BlockSpec((in_dim, bn), lambda i: (0, i)),             # x (chan-major)
        ],
        out_specs=pl.BlockSpec((bn, out_dim), lambda i: (i, 0)),
        compiler_params=pltpu.CompilerParams(
            dimension_semantics=("parallel",),
            vmem_limit_bytes=int(working_set(bn))),
    )(jnp.asarray(cc), jnp.asarray(ph), jnp.asarray(eh), xt)

    return out.reshape(*orig_shape[:-1], out_dim)


def pos_embed_ref(x, *, in_dim=3, include_input=True, n_freqs=6,
                  log_sampling=True, freq_scale=1):
    """Pure-JAX reference mirroring the PyTorch forward."""
    freqs = _compute_freqs(n_freqs, log_sampling, freq_scale)
    parts = [x] if include_input else []
    for f in freqs:
        parts.append(jnp.sin(x * f))
        parts.append(jnp.cos(x * f))
    return jnp.concatenate(parts, axis=-1)


if __name__ == "__main__":
    key = jax.random.PRNGKey(0)
    # Small shapes consistent with the module: a batch of 2 x 100 points in R^3.
    x = jax.random.normal(key, (2, 100, 3), dtype=jnp.float32)
    ref = pos_embed_ref(x)

    out = jax.block_until_ready(pos_embed(x))                 # [2, 100, 39]
    assert out.shape == (2, 100, 3 * (1 + 2 * 6)), out.shape
    assert jnp.allclose(out, ref, atol=1e-4, rtol=1e-4), \
        float(jnp.max(jnp.abs(out - ref)))

    # bf16 output: recommended for this write-bandwidth-bound kernel when the
    # consumer tolerates it (halves HBM writes).
    out_bf16 = jax.block_until_ready(pos_embed(x, out_dtype=jnp.bfloat16))
    assert jnp.allclose(out_bf16.astype(jnp.float32), ref, atol=3e-2, rtol=3e-2)

    # Exercises multi-chunk blocks and the ragged edge grid block.
    x2 = jax.random.normal(jax.random.PRNGKey(1), (1, 1000, 3), dtype=jnp.float32)
    out2 = jax.block_until_ready(pos_embed(x2))
    assert out2.shape == (1, 1000, 39)
    assert jnp.allclose(out2, pos_embed_ref(x2), atol=1e-4, rtol=1e-4)

    print("KERNEL_OK")
</pallas_src>

<mosaic_0001>
module attributes {stable_mosaic.version = 11 : i64} {
  func.func @kernel(%arg0: i32, %arg1: memref<3x40x128xf32, #tpu.memory_space<vmem>>, %arg2: memref<40x128xf32, #tpu.memory_space<vmem>>, %arg3: memref<3x8x128xf32, #tpu.memory_space<vmem>>, %arg4: memref<3x128xf32, #tpu.memory_space<vmem>>, %arg5: memref<128x39xf32, #tpu.memory_space<vmem>>) attributes {dimension_semantics = [#tpu.dimension_semantics<parallel>], iteration_bounds = array<i64: 2>, scalar_prefetch = 0 : i64, scratch_operands = 0 : i64, tpu.core_type = #tpu.core_type<tc>, window_params = [{pipeline_mode = #tpu.pipeline_mode<synchronous>, transform_indices = @transform_0, window_bounds = array<i64: 3, 40, 128>}, {pipeline_mode = #tpu.pipeline_mode<synchronous>, transform_indices = @transform_1, window_bounds = array<i64: 40, 128>}, {pipeline_mode = #tpu.pipeline_mode<synchronous>, transform_indices = @transform_2, window_bounds = array<i64: 3, 8, 128>}, {transform_indices = @transform_3, window_bounds = array<i64: 3, 128>}, {transform_indices = @transform_4, window_bounds = array<i64: 128, 39>}]} {
    %c0_i32 = arith.constant 0 : i32
    %c128_i32 = arith.constant 128 : i32
    %0 = arith.muli %c0_i32, %c128_i32 : i32
    %1 = tpu.assume_multiple %0, 128 : i32
    %c0 = arith.constant 0 : index
    %2 = arith.index_cast %1 : i32 to index
    %3 = vector.load %arg4[%c0, %2] : memref<3x128xf32, #tpu.memory_space<vmem>>, vector<3x128xf32>
    %c0_0 = arith.constant 0 : index
    %c0_1 = arith.constant 0 : index
    %4 = vector.load %arg2[%c0_0, %c0_1] : memref<40x128xf32, #tpu.memory_space<vmem>>, vector<40x128xf32>
    %5 = vector.extract_strided_slice %3 {offsets = [0, 0], sizes = [1, 128], strides = [1, 1]} : vector<3x128xf32> to vector<1x128xf32>
    %6 = vector.shape_cast %5 : vector<1x128xf32> to vector<1x128xf32>
    %7 = vector.broadcast %6 : vector<1x128xf32> to vector<40x128xf32>
    %c0_2 = arith.constant 0 : index
    %c0_3 = arith.constant 0 : index
    %c0_4 = arith.constant 0 : index
    %8 = vector.load %arg1[%c0_2, %c0_3, %c0_4] : memref<3x40x128xf32, #tpu.memory_space<vmem>>, vector<1x40x128xf32>
    %9 = vector.shape_cast %8 : vector<1x40x128xf32> to vector<40x128xf32>
    %10 = arith.mulf %7, %9 : vector<40x128xf32>
    %11 = arith.addf %4, %10 : vector<40x128xf32>
    %12 = vector.shape_cast %5 : vector<1x128xf32> to vector<1x128xf32>
    %13 = vector.broadcast %12 : vector<1x128xf32> to vector<8x128xf32>
    %c0_5 = arith.constant 0 : index
    %c0_6 = arith.constant 0 : index
    %c0_7 = arith.constant 0 : index
    %14 = vector.load %arg3[%c0_5, %c0_6, %c0_7] : memref<3x8x128xf32, #tpu.memory_space<vmem>>, vector<1x8x128xf32>
    %15 = vector.shape_cast %14 : vector<1x8x128xf32> to vector<8x128xf32>
    %16 = arith.mulf %13, %15 : vector<8x128xf32>
    %17 = vector.extract_strided_slice %3 {offsets = [1, 0], sizes = [1, 128], strides = [1, 1]} : vector<3x128xf32> to vector<1x128xf32>
    %18 = vector.shape_cast %17 : vector<1x128xf32> to vector<1x128xf32>
    %19 = vector.broadcast %18 : vector<1x128xf32> to vector<40x128xf32>
    %c1 = arith.constant 1 : index
    %c0_8 = arith.constant 0 : index
    %c0_9 = arith.constant 0 : index
    %20 = vector.load %arg1[%c1, %c0_8, %c0_9] : memref<3x40x128xf32, #tpu.memory_space<vmem>>, vector<1x40x128xf32>
    %21 = vector.shape_cast %20 : vector<1x40x128xf32> to vector<40x128xf32>
    %22 = arith.mulf %19, %21 : vector<40x128xf32>
    %23 = arith.addf %11, %22 : vector<40x128xf32>
    %24 = vector.shape_cast %17 : vector<1x128xf32> to vector<1x128xf32>
    %25 = vector.broadcast %24 : vector<1x128xf32> to vector<8x128xf32>
    %c1_10 = arith.constant 1 : index
    %c0_11 = arith.constant 0 : index
    %c0_12 = arith.constant 0 : index
    %26 = vector.load %arg3[%c1_10, %c0_11, %c0_12] : memref<3x8x128xf32, #tpu.memory_space<vmem>>, vector<1x8x128xf32>
    %27 = vector.shape_cast %26 : vector<1x8x128xf32> to vector<8x128xf32>
    %28 = arith.mulf %25, %27 : vector<8x128xf32>
    %29 = arith.addf %16, %28 : vector<8x128xf32>
    %30 = vector.extract_strided_slice %3 {offsets = [2, 0], sizes = [1, 128], strides = [1, 1]} : vector<3x128xf32> to vector<1x128xf32>
    %31 = vector.shape_cast %30 : vector<1x128xf32> to vector<1x128xf32>
    %32 = vector.broadcast %31 : vector<1x128xf32> to vector<40x128xf32>
    %c2 = arith.constant 2 : index
    %c0_13 = arith.constant 0 : index
    %c0_14 = arith.constant 0 : index
    %33 = vector.load %arg1[%c2, %c0_13, %c0_14] : memref<3x40x128xf32, #tpu.memory_space<vmem>>, vector<1x40x128xf32>
    %34 = vector.shape_cast %33 : vector<1x40x128xf32> to vector<40x128xf32>
    %35 = arith.mulf %32, %34 : vector<40x128xf32>
    %36 = arith.addf %23, %35 : vector<40x128xf32>
    %37 = vector.shape_cast %30 : vector<1x128xf32> to vector<1x128xf32>
    %38 = vector.broadcast %37 : vector<1x128xf32> to vector<8x128xf32>
    %c2_15 = arith.constant 2 : index
    %c0_16 = arith.constant 0 : index
    %c0_17 = arith.constant 0 : index
    %39 = vector.load %arg3[%c2_15, %c0_16, %c0_17] : memref<3x8x128xf32, #tpu.memory_space<vmem>>, vector<1x8x128xf32>
    %40 = vector.shape_cast %39 : vector<1x8x128xf32> to vector<8x128xf32>
    %41 = arith.mulf %38, %40 : vector<8x128xf32>
    %42 = arith.addf %29, %41 : vector<8x128xf32>
    %43 = math.sin %36 : vector<40x128xf32>
    %44 = vector.extract_strided_slice %43 {offsets = [0, 0], sizes = [8, 128], strides = [1, 1]} : vector<40x128xf32> to vector<8x128xf32>
    %45 = arith.addf %44, %42 : vector<8x128xf32>
    %46 = vector.extract_strided_slice %43 {offsets = [8, 0], sizes = [32, 128], strides = [1, 1]} : vector<40x128xf32> to vector<32x128xf32>
    %47 = tpu.concatenate %45, %46 in 0 : vector<8x128xf32>, vector<32x128xf32> -> vector<40x128xf32>
    %cst = arith.constant 0.000000e+00 : f32
    %48 = vector.broadcast %cst : f32 to vector<88x128xf32>
    %49 = tpu.concatenate %47, %48 in 0 : vector<40x128xf32>, vector<88x128xf32> -> vector<128x128xf32>
    %50 = tpu.transpose %49, [1, 0] : vector<128x128xf32> -> vector<128x128xf32>
    %51 = vector.extract_strided_slice %50 {offsets = [0, 0], sizes = [128, 39], strides = [1, 1]} : vector<128x128xf32> to vector<128x39xf32>
    %52 = arith.index_cast %1 : i32 to index
    %c0_18 = arith.constant 0 : index
    %53 = vector.load %arg5[%52, %c0_18] : memref<128x39xf32, #tpu.memory_space<vmem>>, vector<128x39xf32>
    tpu.vector_store %arg5[%52, %c0_18], %51 {strides = array<i32>} : memref<128x39xf32, #tpu.memory_space<vmem>>, vector<128x39xf32>,
    %c1_i32 = arith.constant 1 : i32
    return
  }
  func.func @transform_0(%arg0: i32) -> (i32, i32, i32) {
    %c0_i32 = arith.constant 0 : i32
    %c0_i32_0 = arith.constant 0 : i32
    %c0_i32_1 = arith.constant 0 : i32
    %c0_i32_2 = arith.constant 0 : i32
    return %c0_i32, %c0_i32_0, %c0_i32_1 : i32, i32, i32
  }
  func.func @transform_1(%arg0: i32) -> (i32, i32) {
    %c0_i32 = arith.constant 0 : i32
    %c0_i32_0 = arith.constant 0 : i32
    %c0_i32_1 = arith.constant 0 : i32
    return %c0_i32, %c0_i32_0 : i32, i32
  }
  func.func @transform_2(%arg0: i32) -> (i32, i32, i32) {
    %c0_i32 = arith.constant 0 : i32
    %c0_i32_0 = arith.constant 0 : i32
    %c0_i32_1 = arith.constant 0 : i32
    %c0_i32_2 = arith.constant 0 : i32
    return %c0_i32, %c0_i32_0, %c0_i32_1 : i32, i32, i32
  }
  func.func @transform_3(%arg0: i32) -> (i32, i32) {
    %c0_i32 = arith.constant 0 : i32
    %c0_i32_0 = arith.constant 0 : i32
    return %c0_i32, %arg0 : i32, i32
  }
  func.func @transform_4(%arg0: i32) -> (i32, i32) {
    %c0_i32 = arith.constant 0 : i32
    %c0_i32_0 = arith.constant 0 : i32
    return %arg0, %c0_i32 : i32, i32
  }
}

</mosaic_0001>

<bundles_post_ra>
// kernel: tpu_custom_call.1
= control target key start
LH: loop header
LB: loop body
LE: loop exit
PB: predicated region body
PF: predicated region fallthrough
CT: control target
= control target key end

     0   :  { %9 = vsyncpa [#allocation3], 0  ;;  %s2375_s0 = inlined_call_operand.hbm [shape: f32[3,40,128], index: 0, kind: input, shape index: {}]   ;;  %s2376_s1 = inlined_call_operand.hbm [shape: f32[40,128], index: 1, kind: input, shape index: {}]   ;;  %s2377_s2 = inlined_call_operand.hbm [shape: f32[3,8,128], index: 2, kind: input, shape index: {}]   ;;  %s2378_s3 = inlined_call_operand.hbm [shape: f32[3,200], index: 3, kind: input, shape index: {}]   ;;  %s2379_s4 = inlined_call_operand.vmem [shape: f32[200,39], index: 4, kind: output, shape index: {}]  }
   0x1   :  { %10 = vsyncpa [#allocation5], 0 }
   0x2   :  { %11 = vsyncpa [#allocation8], 0 }
   0x3   :  { %13 = vsyncpa [#allocation8 + $0x1], 0  ;;  %s1709_s15 = smov 0   ;;  %s1711_s16 = smov 0  }
   0x4   :  { %s1713_s17 = smov 0   ;;  %s1715_s18 = smov 0  }
   0x5 LB: > { %s1728_s19 = sadd.s32 4294967295, %s1638_s18   ;;  %p102_p0 = scmp.ne.s32.totalorder %s1630_s16, %s1626_s15  ;;  %s1638_s18 = sphi %s1715_s18, %s2408_s18   ;;  %s1634_s17 = sphi %s1713_s17, %s2407_s17   ;;  %s1630_s16 = sphi %s1711_s16, %s2406_s16   ;;  %s1626_s15 = sphi %s1709_s15, %s2405_s15  }
   0x6   : > { %p2380_p1 = scmp.eq.s32.totalorder %s1728_s19, 0  ;;  %p1222_p3 = scmp.ge.s32.totalorder %s1638_s18, 1 }
   0x7   : > { %p139_p4 = scmp.lt.s32.totalorder %s1638_s18, 3  ;;  %s1672_s22 = smov [#allocation4]  }
   0x8   : > { %p1737_p5 = por %p2380_p1, %p102_p0  ;;  %s164_s23 = sshll.u32 %s1672_s22, 4  ;;  %s165_s23 = int_to_ptr.vmem [resolvable:$true] %s164_s23 }
   0x9   : > { %p1741_p6 = pnand %p1222_p3, %p139_p4  ;;  %s1673_s25 = smov [#allocation2]  }
   0xa   : > { %s2383_s20 = scalar_select %p1737_p5, 1, 0 }
   0xb   : > { %s2384_s21 = scalar_select %p1741_p6, 1, 0 }
   0xc   : > { %p1309_p7 = pneg %p1741_p6  ;;  %s151_s26 = sshll.u32 %s1673_s25, 4  ;;  %s152_s26 = int_to_ptr.vmem [resolvable:$true] %s151_s26 }
   0xd   : > { %s1469_s27 = scalar_lea.vmem %s165_s23, 640  ;;  %p1477_p13 = scmp.lt.s32.totalorder %s165_s23, %s165_s23 }
   0xe   : > { %p1749_p8 = pnand %p1309_p7, %p2380_p1  ;;  %p1470_p10 = scmp.ne.s32.totalorder %s165_s23, %s1469_s27 }
   0xf   : > { %p1478_p0 = scmp.lt.s32.totalorder %s1469_s27, %s1469_s27 }
  0x10   : > { %p1460_p9 = pneg %p1749_p8 }
  0x11   : > { %p1479_p3 = por %p1478_p0, %p1477_p13 }
  0x12   : > { %p1472_p11 = pnand %p1470_p10, %p1460_p9 }
  0x14   : > { %p1473_p12 = pneg %p1472_p11 }
  0x16   : > { %p1480_p4 = pnand %p1479_p3, %p1473_p12 }
  0x18   : > { %1483 = shalt.err (!%p1480_p4)
}
  0x19   : > { %s1674_s28 = smov 128   ;;  %s1675_s29 = smov 8  }
  0x1a   : > { %1315 = dma.hbm_to_vmem [thread:$0]  (!%p1749_p8), %s2376_s1, 640, %s165_s23, [#allocation5], %s1674_s28, %s1674_s28, %s1675_s29  }
  0x1b   : > { %s1495_s6 = scalar_lea.vmem %s152_s26, 1920  ;;  %p1503_p1 = scmp.lt.s32.totalorder %s152_s26, %s152_s26 }
  0x1c   : > { %p1496_p7 = scmp.ne.s32.totalorder %s152_s26, %s1495_s6  ;;  %p1504_p2 = scmp.lt.s32.totalorder %s1495_s6, %s1495_s6 }
  0x1e   : > { %p1498_p10 = pnand %p1496_p7, %p1460_p9  ;;  %p1505_p13 = por %p1504_p2, %p1503_p1 }
  0x20   : > { %p1499_p11 = pneg %p1498_p10 }
  0x22   : > { %p1506_p12 = pnand %p1505_p13, %p1499_p11 }
  0x24   : > { %1509 = shalt.err (!%p1506_p12)
}
  0x25   : > { %1312 = dma.hbm_to_vmem [thread:$0]  (!%p1749_p8), %s2375_s0, 1920, %s152_s26, [#allocation3], %s1674_s28, %s1674_s28, %s1675_s29  }
  0x26   : > { %s1676_s9 = smov [#allocation6]  }
  0x27   : > { %s177_s10 = sshll.u32 %s1676_s9, 4  ;;  %s178_s10 = int_to_ptr.vmem [resolvable:$true] %s177_s10 }
  0x28   : > { %s1521_s11 = scalar_lea.vmem %s178_s10, 384  ;;  %p1529_p7 = scmp.lt.s32.totalorder %s178_s10, %s178_s10 }
  0x29   : > { %p1522_p0 = scmp.ne.s32.totalorder %s178_s10, %s1521_s11  ;;  %p1530_p1 = scmp.lt.s32.totalorder %s1521_s11, %s1521_s11 }
  0x2b   : > { %p1524_p3 = pnand %p1522_p0, %p1460_p9  ;;  %p1531_p2 = por %p1530_p1, %p1529_p7 }
  0x2d   : > { %p1525_p4 = pneg %p1524_p3 }
  0x2f   : > { %p1532_p10 = pnand %p1531_p2, %p1525_p4 }
  0x31   : > { %1535 = shalt.err (!%p1532_p10)
}
  0x32   : > { %1318 = dma.hbm_to_vmem [thread:$0]  (!%p1749_p8), %s2377_s2, 384, %s178_s10, [#allocation5], %s1674_s28, %s1674_s28, %s1675_s29  }
  0x33   : > { %s1780_s14 = sadd.s32 1, %s1638_s18   ;;  %s89_s15 = sadd.s32 1, %s1634_s17 }
  0x34   : > { %s86_s22 = ssub.s32 %s1638_s18, %s1780_s14  ;;  %p96_p9 = scmp.ne.s32.totalorder %s1634_s17, %s1630_s16 }
  0x35   : > { %p87_p11 = scmp.eq.s32.totalorder %s86_s22, 0  ;;  %p97_p13 = scmp.eq.s32.totalorder %s1638_s18, 0 }
  0x36   : > { %p2386_p12 = scmp.eq.s32.totalorder %s1728_s19, 1  ;;  %p1326_p3 = scmp.lt.s32.totalorder %s1638_s18, 2 }
  0x37   : > { %s1796_s24 = scalar_select %p87_p11, %s1634_s17, %s89_s15  }
  0x38   : > { %p1790_p0 = por %p2386_p12, %p96_p9  ;;  %p98_p4 = por %p97_p13, %p96_p9 }
  0x39   : > { %s191_s25 = sand.u32 1, %s1634_s17   ;;  %s1228_s27 = sshll.u32 %s1638_s18, 6 }
  0x3a   : > { %s2387_s23 = scalar_select %p1790_p0, 1, 0 }
  0x3b   : > { %s1227_s26 = sshll.u32 %s191_s25, 2  ;;  %s1803_s30 = scalar_lea.hbm %s2378_s3, %s1228_s27 }
  0x3c   : > { %s195_s5 = scalar_lea.vmem [#allocation7], %s1227_s26  ;;  %p1805_p8 = pnand %p1326_p3, %p98_p4 }
  0x3d   : > { %s202_s6 = sshll.u32 %s195_s5, 4  ;;  %s192_s8 = scalar_lea.sflag [#allocation8], %s191_s25  ;;  %s203_s6 = int_to_ptr.vmem [resolvable:$true] %s202_s6 }
  0x3e   : > { %s1536_s9 = scalar_lea.hbm %s1803_s30, 64  ;;  %p1538_p1 = pneg %p1805_p8 }
  0x3f   : > { %p1537_p7 = scmp.ne.s32.totalorder %s1803_s30, %s1536_s9  ;;  %s1541_s11 = scalar_lea.hbm %s2378_s3, 128 }
  0x40   : > { %p1542_p9 = scmp.lt.s32.totalorder %s1803_s30, %s2378_s3  ;;  %p1543_p11 = scmp.lt.s32.totalorder %s1541_s11, %s1536_s9 }
  0x41   : > { %p1539_p2 = pnand %p1538_p1, %p1537_p7 }
  0x42   : > { %p1544_p13 = por %p1543_p11, %p1542_p9 }
  0x43   : > { %p1540_p10 = pneg %p1539_p2 }
  0x45   : > { %p1545_p12 = pnand %p1544_p13, %p1540_p10 }
  0x47   : > { %1548 = shalt.err (!%p1545_p12)
}
  0x48   : > { %s1549_s15 = scalar_lea.vmem %s203_s6, 64  ;;  %s1677_s22 = smov [#allocation7]  }
  0x49   : > { %p1550_p3 = scmp.ne.s32.totalorder %s203_s6, %s1549_s15  ;;  %s1554_s25 = sshll.u32 %s1677_s22, 4  ;;  %s1555_s25 = int_to_ptr.vmem [resolvable:$false] %s1554_s25 }
  0x4a   : > { %s1556_s26 = scalar_lea.vmem %s1555_s25, 128  ;;  %p1557_p7 = scmp.lt.s32.totalorder %s203_s6, %s1555_s25 }
  0x4b   : > { %p1552_p4 = pnand %p1550_p3, %p1538_p1  ;;  %p1558_p2 = scmp.lt.s32.totalorder %s1556_s26, %s1549_s15 }
  0x4d   : > { %p1553_p0 = pneg %p1552_p4  ;;  %p1559_p5 = por %p1558_p2, %p1557_p7 }
  0x4f   : > { %p1560_p6 = pnand %p1559_p5, %p1553_p0 }
  0x51   : > { %1563 = shalt.err (!%p1560_p6)
}
  0x52   : > { %1322 = dma.hbm_to_vmem [thread:$0]  (!%p1805_p8), %s1803_s30, 64, %s203_s6, %s192_s8  }
  0x53   : > { %p2389_p10 = scmp.ne.s32.totalorder %s2384_s21, 0 }
  0x54   : > { %p2390_p9 = scmp.eq.s32.totalorder (!%p2389_p10), %s1728_s19, 0 }
  0x55   : > { %211 = sbr.rel (%p2389_p10) target bundleno = 492 (0x1ec), region = 36 }
  0x5a   : > { %1613 = dma.done.wait (%p2390_p9), [#allocation3], 1920   ;;  %p2391_p1 = pmov %p2390_p9 }
  0x5c   : > { %1615 = vsyncadd (%p2391_p1), [#allocation3], 4294965376  ;;  %p2392_p11 = pmov %p2391_p1 }
  0x5d   : > { %p2393_p13 = pmov %p2391_p1 }
  0x5e   : > { %1617 = dma.done.wait (%p2392_p11), [#allocation5], 1024  }
  0x5f   : > { %1619 = vsyncadd (%p2393_p13), [#allocation5], 4294966272  ;;  %s1834_s27 = sand.u32 1, %s1630_s16   ;;  %p2394_p5 = scmp.ne.s32.totalorder %s2383_s20, 0 }
  0x60   : > { %s1233_s21 = sshll.u32 %s1834_s27, 2  ;;  %s226_s28 = scalar_lea.sflag [#allocation8], %s1834_s27 }
  0x61   : > { %s229_s29 = scalar_lea.vmem [#allocation7], %s1233_s21 }
  0x62   : > { %1621 = dma.done.wait (%p2394_p5), %s226_s28, 64  }
  0x63   : > { %1623 = vsyncadd (%p2394_p5), %s226_s28, 4294967232  ;;  %v264_v0 = vlaneseq  ;;  %v258_v5 = vld [vmem:[%s229_s29] sm:$0x7]  ;;  %v268_v7 = vld [vmem:[#allocation2] sm:$0xff]  ;;  %s1234_s20 = sshll.u32 %s1834_s27, 7  ;;  %p2401_p6 = scmp.ne.s32.totalorder %s2387_s23, 0 }
  0x64   : > { %v259_v6 = vld [vmem:[#allocation4] sm:$0xff]  ;;  %v283_v9 = vld [vmem:[#allocation6] sm:$0xff]  ;;  %v290_v11 = vld [vmem:[#allocation2 + $0x28] sm:$0xff]  ;;  %s2238_s30 = scalar_lea.vmem [#allocation9], %s1234_s20   ;;  %s1256_s5 = sshll.u32 (%p2401_p6), %s1728_s19, 4 }
  0x65   : > { %v265_v1 = vshrl.u32 %v264_v0, 7  ;;  %v306_v12 = vld [vmem:[#allocation6 + $0x8] sm:$0xff]  ;;  %v314_v14 = vld [vmem:[#allocation2 + $0x50] sm:$0xff]  ;;  %v260_v16 = vld [vmem:[#allocation4 + $0x8] sm:$0xff]  ;;  %s1272_s6 = sshll.u32 (%p2401_p6), %s1728_s19, 7  ;;  %s911_s7 = ssub.s32 (%p2401_p6), 25, %s1256_s5 }
  0x66   : > { %v330_v15 = vld [vmem:[#allocation6 + $0x10] sm:$0xff]  ;;  %v269_v21 = vld [vmem:[#allocation2 + $0x8] sm:$0xff]  ;;  %v315_v23 = vld [vmem:[#allocation2 + $0x58] sm:$0xff]  ;;  %s2279_s18 = scalar_lea.vmem (%p2401_p6), %s2379_s4, %s1272_s6   ;;  %p912_p0 = scmp.lt.s32.totalorder (%p2401_p6), %s911_s7, 16 }
  0x67   : > { %v266_v2 = vsub.s32 0, %v265_v1  ;;  %v287_v3 = vsub.s32 1, %v265_v1  ;;  %v311_v4 = vsub.s32 2, %v265_v1  ;;  %v291_v22 = vld [vmem:[#allocation2 + $0x30] sm:$0xff]  ;;  %v261_v27 = vld [vmem:[#allocation4 + $0x10] sm:$0xff]  ;;  %v292_v29 = vld [vmem:[#allocation2 + $0x38] sm:$0xff] }
  0x68   : > { %v270_v28 = vld [vmem:[#allocation2 + $0x10] sm:$0xff]  ;;  %v316_v37 = vld [vmem:[#allocation2 + $0x60] sm:$0xff]  ;;  %v271_v42 = vld [vmem:[#allocation2 + $0x18] sm:$0xff] }
  0x69   : > { %v267_v8 = vrot.slane %v258_v5, %v266_v2  ;;  %v1842_v10 = vrot.slane %v258_v5, %v287_v3  ;;  %v1844_v13 = vrot.slane %v258_v5, %v311_v4  ;;  %v262_v52 = vld [vmem:[#allocation4 + $0x18] sm:$0xff]  ;;  %v293_v53 = vld [vmem:[#allocation2 + $0x40] sm:$0xff]  ;;  %v317_v1 = vld [vmem:[#allocation2 + $0x68] sm:$0xff] }
  0x6a   : > { %v272_v56 = vld [vmem:[#allocation2 + $0x20] sm:$0xff]  ;;  %v294_v3 = vld [vmem:[#allocation2 + $0x48] sm:$0xff]  ;;  %v263_v5 = vld [vmem:[#allocation4 + $0x20] sm:$0xff] }
  0x6b   : > { %v273_v17 = vmul.f32 %v268_v7, %v267_v8  ;;  %v284_v18 = vmul.f32 %v283_v9, %v267_v8  ;;  %v295_v19 = vmul.f32 %v290_v11, %v1842_v10  ;;  %v307_v20 = vmul.f32 %v306_v12, %v1842_v10 }
  0x6c   : > { %v331_v24 = vmul.f32 %v330_v15, %v1844_v13  ;;  %v274_v25 = vmul.f32 %v269_v21, %v267_v8  ;;  %v296_v26 = vmul.f32 %v291_v22, %v1842_v10  ;;  %v319_v32 = vmul.f32 %v314_v14, %v1844_v13 }
  0x6d   : > { %v278_v30 = vadd.f32 %v273_v17, %v259_v6  ;;  %v308_v31 = vadd.f32 %v307_v20, %v284_v18  ;;  %v275_v33 = vmul.f32 %v270_v28, %v267_v8  ;;  %v320_v35 = vmul.f32 %v315_v23, %v1844_v13 }
  0x6e   : > { %v279_v34 = vadd.f32 %v274_v25, %v260_v16  ;;  %v297_v36 = vmul.f32 %v292_v29, %v1842_v10  ;;  %v321_v45 = vmul.f32 %v316_v37, %v1844_v13  ;;  %v276_v49 = vmul.f32 %v271_v42, %v267_v8 }
  0x6f   : > { %v300_v38 = vadd.f32 %v295_v19, %v278_v30  ;;  %v1853_v39 = vadd.f32 %v331_v24, %v308_v31  ;;  %v280_v40 = vadd.f32 %v275_v33, %v261_v27  ;;  %v298_v62 = vmul.f32 %v293_v53, %v1842_v10 }
  0x70   : > { %v301_v41 = vadd.f32 %v296_v26, %v279_v34  ;;  %v281_v61 = vadd.f32 %v276_v49, %v262_v52  ;;  %v277_v2 = vmul.f32 %v272_v56, %v267_v8  ;;  %v1875_v14 = vmul.f32 %v317_v1, %v1844_v13 }
  0x71   : > { %v1855_v43 = vadd.f32 %v319_v32, %v300_v38  ;;  %v302_v44 = vadd.f32 %v297_v36, %v280_v40  ;;  %v1878_v15 = vmul.f32 %v294_v3, %v1842_v10  ;;  %v1678_v10 = vmov 683565275  }
  0x72   : > { %v1858_v46 = vadd.f32 %v320_v35, %v301_v41  ;;  %v1872_v12 = vadd.f32 %v298_v62, %v281_v61  ;;  %v1880_v8 = vadd.f32 %v277_v2, %v263_v5  ;;  %v1679_v28 = vmov 2475754826  }
  0x73   : > { %v333_v47 = vand.u32 2147483647, %v1855_v43  ;;  %v336_v48 = vand.u32 2139095040, %v1855_v43  ;;  %v1864_v55 = vadd.f32 %v321_v45, %v302_v44  ;;  %v1680_v30 = vmov 2131351028  }
  0x74   : > { %v437_v50 = vand.u32 2147483647, %v1858_v46  ;;  %v440_v51 = vand.u32 2139095040, %v1858_v46  ;;  %v1681_v32 = vmov 2102212464   ;;  %vm335_vm13 = vcmp.lt.s32.totalorder %v1855_v43, 0 }
  0x75   : > { %v337_v54 = vshrl.u32 %v336_v48, 23  ;;  %v340_v57 = vand.u32 8388607, %v333_v47  ;;  %v544_v0 = vand.u32 2139095040, %v1864_v55  ;;  %v541_v21 = vand.u32 2147483647, %v1864_v55 }
  0x76   : > { %v441_v58 = vshrl.u32 %v440_v51, 23  ;;  %v444_v59 = vand.u32 8388607, %v437_v50  ;;  %v1682_v34 = vmov 920167782  }
  0x77   : > { %v1235_v60 = vadd.s32 4294967169, %v337_v54  ;;  %v341_v6 = vor.u32 8388608, %v340_v57  ;;  %v545_v11 = vshrl.u32 %v544_v0, 23  ;;  %v1683_v44 = vmov 1326507024  }
  0x78   : > { %v1239_v63 = vadd.s32 4294967169, %v441_v58  ;;  %v445_v7 = vor.u32 8388608, %v444_v59 }
  0x79   : > { %v343_v4 = vadd.s32 1, %v1235_v60  ;;  %v1243_v17 = vadd.s32 4294967169, %v545_v11  ;;  %v1883_v22 = vshll.u32 %v341_v6, 8 }
  0x7a   : > { %v447_v9 = vadd.s32 1, %v1239_v63  ;;  %v1887_v25 = vshll.u32 %v445_v7, 8 }
  0x7b   : > { %vm344_vm0 = vcmp.gt.s32.totalorder %v343_v4, 0  ;;  %v1894_v36 = vadd.s32 1, %v1243_v17 }
  0x7c   : > { %v345_v16 = vsel %vm344_vm0, %v343_v4, 0  ;;  %vm448_vm1 = vcmp.gt.s32.totalorder %v447_v9, 0  ;;  %vm2009_vm0 = vcmp.le.f32.partialorder %v333_v47, 0.7853982 }
  0x7d   : > { %v346_v18 = vshrl.u32 %v345_v16, 5  ;;  %v347_v19 = vand.u32 31, %v345_v16  ;;  %v449_v20 = vsel %vm448_vm1, %v447_v9, 0  ;;  %vm552_vm11 = vcmp.gt.s32.totalorder %v1894_v36, 0 }
  0x7e   : > { %v1885_v23 = vshrl.u32 %v449_v20, 5  ;;  %v451_v24 = vand.u32 31, %v449_v20 }
  0x7f   : > { %v348_v26 = vsub.s32 32, %v347_v19  ;;  %v350_v27 = vshll.u32 %v1678_v10, %v347_v19  ;;  %v353_v29 = vshll.u32 %v1679_v28, %v347_v19  ;;  %v356_v31 = vshll.u32 %v1680_v30, %v347_v19 }
  0x80   : > { %v359_v33 = vshll.u32 %v1681_v32, %v347_v19  ;;  %v362_v35 = vshll.u32 %v1682_v34, %v347_v19  ;;  %vm365_vm2 = vcmp.lt.s32.totalorder %v346_v18, 1  ;;  %vm366_vm3 = vcmp.lt.s32.totalorder %v346_v18, 2 }
  0x81   : > { %v349_v37 = vshrl.u32 %v1678_v10, %v348_v26  ;;  %v351_v38 = vshrl.u32 %v1679_v28, %v348_v26  ;;  %v354_v40 = vshrl.u32 %v1680_v30, %v348_v26  ;;  %v357_v41 = vshrl.u32 %v1681_v32, %v348_v26 }
  0x82   : > { %v360_v42 = vshrl.u32 %v1682_v34, %v348_v26  ;;  %v363_v45 = vshrl.u32 %v1683_v44, %v348_v26  ;;  %vm368_vm4 = vcmp.lt.s32.totalorder %v346_v18, 4  ;;  %v452_v52 = vsub.s32 32, %v451_v24 }
  0x83   : > { %v352_v48 = vor.u32 %v351_v38, %v350_v27  ;;  %v355_v49 = vor.u32 %v354_v40, %v353_v29  ;;  %v358_v51 = vor.u32 %v357_v41, %v356_v31  ;;  %vm367_vm5 = vcmp.lt.s32.totalorder %v346_v18, 3 }
  0x84   : > { %v361_v53 = vor.u32 %v360_v42, %v359_v33  ;;  %v364_v54 = vor.u32 %v363_v45, %v362_v35  ;;  %v454_v56 = vshll.u32 %v1678_v10, %v451_v24  ;;  %v457_v0 = vshll.u32 %v1679_v28, %v451_v24 }
  0x85   : > { %v369_v57 = vsel %vm365_vm2, %v349_v37, %v352_v48  ;;  %v370_v58 = vsel %vm368_vm4, %v358_v51, 2102212464  ;;  %v373_v59 = vsel %vm365_vm2, %v352_v48, %v355_v49  ;;  %v377_v60 = vsel %vm365_vm2, %v355_v49, %v358_v51 }
  0x86   : > { %v371_v61 = vsel %vm367_vm5, %v355_v49, %v370_v58  ;;  %v374_v62 = vsel %vm368_vm4, %v361_v53, 920167782  ;;  %v378_v63 = vsel %vm368_vm4, %v364_v54, 1326507024  ;;  %v453_v3 = vshrl.u32 %v1678_v10, %v452_v52 }
  0x87   : > { %v375_v1 = vsel %vm367_vm5, %v358_v51, %v374_v62  ;;  %v379_v2 = vsel %vm367_vm5, %v361_v53, %v378_v63  ;;  %v455_v4 = vshrl.u32 %v1679_v28, %v452_v52  ;;  %v372_v5 = vsel %vm366_vm3, %v369_v57, %v371_v61 }
  0x88   : > { %v376_v6 = vsel %vm366_vm3, %v373_v59, %v375_v1  ;;  %v380_v7 = vsel %vm366_vm3, %v377_v60, %v379_v2  ;;  %v458_v9 = vshrl.u32 %v1680_v30, %v452_v52  ;;  %v460_v27 = vshll.u32 %v1680_v30, %v451_v24 }
  0x89   : > { %v1914_v11 = vmul.u32.u64.low %v1883_v22, %v380_v7  ;;  %v1915_v16 = vmul.u32.u64.high %v1883_v22, %v380_v7, %v1914_v11  ;;  %v1918_v17 = vmul.u32.u64.low %v1883_v22, %v376_v6  ;;  %v1919_v19 = vmul.u32.u64.high %v1883_v22, %v376_v6, %v1918_v17 }
  0x8a   : > { %v456_v20 = vor.u32 %v455_v4, %v454_v56  ;;  %v459_v26 = vor.u32 %v458_v9, %v457_v0  ;;  %v461_v29 = vshrl.u32 %v1681_v32, %v452_v52  ;;  %v463_v18 = vshll.u32 %v1681_v32, %v451_v24  ;;  %v318_v11 = vld [vmem:[#allocation2 + $0x70] sm:$0xff] }
  0x8b   : > { %v464_v31 = vshrl.u32 %v1682_v34, %v452_v52  ;;  %v466_v33 = vshll.u32 %v1682_v34, %v451_v24  ;;  %v467_v35 = vshrl.u32 %v1683_v44, %v452_v52  ;;  %v388_v37 = vmul.u32 %v1883_v22, %v372_v5 }
  0x8c   : > { %v462_v38 = vor.u32 %v461_v29, %v460_v27  ;;  %vm469_vm6 = vcmp.lt.s32.totalorder %v1885_v23, 1  ;;  %vm470_vm7 = vcmp.lt.s32.totalorder %v1885_v23, 2  ;;  %vm390_vm8 = vc.u32 %v1915_v16, %v1918_v17 }
  0x8d   : > { %v391_v40 = vadd.s32 1, %v1919_v19  ;;  %v465_v41 = vor.u32 %v464_v31, %v463_v18  ;;  %vm471_vm9 = vcmp.lt.s32.totalorder %v1885_v23, 3  ;;  %v468_v42 = vor.u32 %v467_v35, %v466_v33 }
  0x8e   : > { %vm472_vm10 = vcmp.lt.s32.totalorder %v1885_v23, 4  ;;  %v473_v24 = vsel %vm469_vm6, %v453_v3, %v456_v20  ;;  %v477_v45 = vsel %vm469_vm6, %v456_v20, %v459_v26  ;;  %v481_v51 = vsel %vm469_vm6, %v459_v26, %v462_v38 }
  0x8f   : > { %v392_v22 = vsel %vm390_vm8, %v391_v40, %v1919_v19  ;;  %v474_v48 = vsel %vm472_vm10, %v462_v38, 2102212464  ;;  %v478_v49 = vsel %vm472_vm10, %v465_v41, 920167782  ;;  %v482_v56 = vsel %vm472_vm10, %v468_v42, 1326507024 }
  0x90   : > { %v393_v52 = vadd.s32 %v392_v22, %v388_v37  ;;  %v475_v53 = vsel %vm471_vm9, %v459_v26, %v474_v48  ;;  %v479_v54 = vsel %vm471_vm9, %v462_v38, %v478_v49  ;;  %v483_v59 = vsel %vm471_vm9, %v465_v41, %v482_v56 }
  0x91   : > { %v476_v57 = vsel %vm470_vm7, %v473_v24, %v475_v53  ;;  %v480_v58 = vsel %vm470_vm7, %v477_v45, %v479_v54  ;;  %v484_v61 = vsel %vm470_vm7, %v481_v51, %v483_v59  ;;  %v553_v2 = vsel %vm552_vm11, %v1894_v36, 0 }
  0x92   : > { %v394_v60 = vadd.s32 536870912, %v393_v52  ;;  %v1945_v62 = vmul.u32.u64.low %v1887_v25, %v480_v58  ;;  %v1946_v63 = vmul.u32.u64.high %v1887_v25, %v480_v58, %v1945_v62  ;;  %v555_v4 = vand.u32 31, %v553_v2 }
  0x93   : > { %v1950_v0 = vmul.u32.u64.low %v1887_v25, %v484_v61  ;;  %v1951_v1 = vmul.u32.u64.high %v1887_v25, %v484_v61, %v1950_v0  ;;  %v492_v5 = vmul.u32 %v1887_v25, %v476_v57  ;;  %v548_v23 = vand.u32 8388607, %v541_v21 }
  0x94   : > { %v1954_v3 = vshrl.u32 %v394_v60, 30  ;;  %v1961_v6 = vadd.f32 %v1875_v14, %v1872_v12  ;;  %v1965_v7 = vadd.f32 %v1878_v15, %v1880_v8  ;;  %v495_v36 = vadd.s32 1, %v1946_v63 }
  0x95   : > { %vm494_vm12 = vc.u32 %v1951_v1, %v1945_v62  ;;  %v556_v25 = vsub.s32 32, %v555_v4  ;;  %v549_v12 = vor.u32 8388608, %v548_v23  ;;  %v1976_v15 = vmul.f32 %v318_v11, %v1844_v13 }
  0x96   : > { %v396_v9 = vshll.u32 %v1954_v3, 30  ;;  %v496_v20 = vsel %vm494_vm12, %v495_v36, %v1946_v63  ;;  %v648_v14 = vand.u32 2139095040, %v1961_v6  ;;  %v1979_v27 = vshrl.u32 %v553_v2, 5 }
  0x97   : > { %v497_v26 = vadd.s32 %v496_v20, %v492_v5  ;;  %v558_v29 = vshll.u32 %v1678_v10, %v555_v4  ;;  %v561_v18 = vshll.u32 %v1679_v28, %v555_v4  ;;  %v559_v33 = vshrl.u32 %v1679_v28, %v556_v25 }
  0x98   : > { %v1971_v19 = vsub.s32 %v393_v52, %v396_v9  ;;  %v562_v35 = vshrl.u32 %v1680_v30, %v556_v25  ;;  %v564_v37 = vshll.u32 %v1680_v30, %v555_v4  ;;  %v565_v13 = vshrl.u32 %v1681_v32, %v556_v25 }
  0x99   : > { %v498_v31 = vadd.s32 536870912, %v497_v26  ;;  %v567_v40 = vshll.u32 %v1681_v32, %v555_v4  ;;  %v568_v41 = vshrl.u32 %v1682_v34, %v556_v25  ;;  %v570_v24 = vshll.u32 %v1682_v34, %v555_v4 }
  0x9a   : > { %v399_v8 = vsub.s32 0, %v1971_v19  ;;  %v571_v45 = vshrl.u32 %v1683_v44, %v556_v25  ;;  %v645_v22 = vand.u32 2147483647, %v1961_v6  ;;  %v389_v48 = vadd.s32 %v1918_v17, %v1915_v16 }
  0x9b   : > { %v1990_v42 = vshrl.u32 %v498_v31, 30  ;;  %v1998_v51 = vshll.u32 %v549_v12, 8  ;;  %v649_v52 = vshrl.u32 %v648_v14, 23  ;;  %v557_v54 = vshrl.u32 %v1678_v10, %v556_v25 }
  0x9c   : > { %v1236_v38 = vmin.u32 %v399_v8, %v1971_v19  ;;  %v560_v56 = vor.u32 %v559_v33, %v558_v29  ;;  %v563_v57 = vor.u32 %v562_v35, %v561_v18  ;;  %v566_v59 = vor.u32 %v565_v13, %v564_v37 }
  0x9d   : > { %v500_v53 = vshll.u32 %v1990_v42, 30  ;;  %v569_v60 = vor.u32 %v568_v41, %v567_v40  ;;  %vm573_vm14 = vcmp.lt.s32.totalorder %v1979_v27, 1  ;;  %v419_v61 = vsub.s32 4, %v1954_v3 }
  0x9e   : > { %v401_v49 = vclz %v1236_v38  ;;  %v572_v16 = vor.u32 %v571_v45, %v570_v24  ;;  %vm576_vm15 = vcmp.lt.s32.totalorder %v1979_v27, 4  ;;  %vm574_vm2 = vcmp.lt.s32.totalorder %v1979_v27, 2 }
  0x9f   : > { %v2004_v63 = vsub.s32 %v497_v26, %v500_v53  ;;  %vm575_vm3 = vcmp.lt.s32.totalorder %v1979_v27, 3  ;;  %v578_v0 = vsel %vm576_vm15, %v566_v59, 2102212464  ;;  %v577_v5 = vsel %vm573_vm14, %v557_v54, %v560_v56 }
  0xa0   : > { %v1237_v58 = vadd.s32 4294967294, %v401_v49  ;;  %v581_v47 = vsel %vm573_vm14, %v560_v56, %v563_v57  ;;  %v582_v11 = vsel %vm576_vm15, %v569_v60, 920167782  ;;  %v579_v20 = vsel %vm575_vm3, %v563_v57, %v578_v0 }
  0xa1   : > { %v503_v4 = vsub.s32 0, %v2004_v63  ;;  %v583_v26 = vsel %vm575_vm3, %v566_v59, %v582_v11  ;;  %v585_v12 = vsel %vm573_vm14, %v563_v57, %v566_v59  ;;  %v586_v29 = vsel %vm576_vm15, %v572_v16, 1326507024 }
  0xa2   : > { %vm1238_vm1 = vcmp.lt.s32.totalorder %v1237_v58, 0  ;;  %v420_v18 = vsel %vm335_vm13, %v419_v61, %v1954_v3  ;;  %vm439_vm4 = vcmp.lt.s32.totalorder %v1858_v46, 0  ;;  %v493_v31 = vadd.s32 %v1945_v62, %v1951_v1 }
  0xa3   : > { %v404_v2 = vsel %vm1238_vm1, 0, %v1237_v58  ;;  %v1240_v25 = vmin.u32 %v503_v4, %v2004_v63  ;;  %v1247_v35 = vadd.s32 4294967169, %v649_v52  ;;  %v580_v13 = vsel %vm574_vm2, %v577_v5, %v579_v20 }
  0xa4   : > { %v405_v23 = vsub.s32 32, %v404_v2  ;;  %v406_v9 = vshll.u32 %v1971_v19, %v404_v2  ;;  %v409_v36 = vsub.s32 4294967266, %v404_v2  ;;  %v584_v19 = vsel %vm574_vm2, %v581_v47, %v583_v26 }
  0xa5   : > { %v505_v33 = vclz %v1240_v25  ;;  %v587_v40 = vsel %vm575_vm3, %v569_v60, %v586_v29  ;;  %v2049_v3 = vmul.u32.u64.low %v1998_v51, %v584_v19  ;;  %v2050_v45 = vmul.u32.u64.high %v1998_v51, %v584_v19, %v2049_v3 }
  0xa6   : > { %v407_v14 = vshrl.u32 %v389_v48, %v405_v23  ;;  %v410_v8 = vadd.s32 127, %v409_v36  ;;  %v588_v24 = vsel %vm574_vm2, %v585_v12, %v587_v40  ;;  %v422_v52 = vsel %vm2009_vm0, 0, %v420_v18 }
  0xa7   : > { %v1241_v41 = vadd.s32 4294967294, %v505_v33  ;;  %v2054_v48 = vmul.u32.u64.low %v1998_v51, %v588_v24  ;;  %v2055_v49 = vmul.u32.u64.high %v1998_v51, %v588_v24, %v2054_v48  ;;  %v655_v53 = vadd.s32 1, %v1247_v35 }
  0xa8   : > { %v408_v37 = vor.u32 %v407_v14, %v406_v9  ;;  %v411_v38 = vshll.u32 %v410_v8, 23  ;;  %v2061_v27 = vadd.f32 %v1976_v15, %v1965_v7  ;;  %v523_v57 = vsub.s32 4, %v1990_v42 }
  0xa9   : > { %vm1242_vm5 = vcmp.lt.s32.totalorder %v1241_v41, 0  ;;  %v596_v58 = vmul.u32 %v1998_v51, %v580_v13  ;;  %v599_v16 = vadd.s32 1, %v2050_v45  ;;  %v426_v2 = vadd.s32 3, %v422_v52 }
  0xaa   : > { %v412_v62 = vor.u32 4788187, %v411_v38  ;;  %v415_v1 = vcvt.s32.f32 %v408_v37  ;;  %v508_v56 = vsel %vm1242_vm5, 0, %v1241_v41  ;;  %vm598_vm6 = vc.u32 %v2055_v49, %v2049_v3 }
  0xab   : > { %v509_v59 = vsub.s32 32, %v508_v56  ;;  %v510_v60 = vshll.u32 %v2004_v63, %v508_v56  ;;  %v513_v61 = vsub.s32 4294967266, %v508_v56  ;;  %vm656_vm7 = vcmp.gt.s32.totalorder %v655_v53, 0 }
  0xac   : > { %v413_v54 = vand.u32 2147483647, %v412_v62  ;;  %v600_v4 = vsel %vm598_vm6, %v599_v16, %v2050_v45  ;;  %v657_v5 = vsel %vm656_vm7, %v655_v53, 0  ;;  %v524_v51 = vsel %vm439_vm4, %v523_v57, %v1990_v42 }
  0xad   : > { %v511_v7 = vshrl.u32 %v493_v31, %v509_v59  ;;  %v514_v15 = vadd.s32 127, %v513_v61  ;;  %v601_v63 = vadd.s32 %v600_v4, %v596_v58  ;;  %v659_v23 = vand.u32 31, %v657_v5 }
  0xae   : > { %v416_v0 = vmul.f32 %v415_v1, %v413_v54  ;;  %vm2075_vm8 = vcmp.le.f32.partialorder %v437_v50, 0.7853982  ;;  %v652_v25 = vand.u32 8388607, %v645_v22  ;;  %v2083_v26 = vand.u32 3, %v426_v2 }
  0xaf   : > { %v512_v36 = vor.u32 %v511_v7, %v510_v60  ;;  %v515_v11 = vshll.u32 %v514_v15, 23  ;;  %v602_v12 = vadd.s32 536870912, %v601_v63  ;;  %v660_v42 = vsub.s32 32, %v659_v23 }
  0xb0   : > { %v417_v47 = vxor.u32 2147483648, %v416_v0  ;;  %v526_v19 = vsel %vm2075_vm8, 0, %v524_v51  ;;  %v662_v18 = vshll.u32 %v1678_v10, %v659_v23  ;;  %v665_v35 = vshll.u32 %v1679_v28, %v659_v23 }
  0xb1   : > { %v516_v50 = vor.u32 4788187, %v515_v11  ;;  %v519_v8 = vcvt.s32.f32 %v512_v36  ;;  %v2090_v29 = vshrl.u32 %v602_v12, 30  ;;  %v663_v31 = vshrl.u32 %v1679_v28, %v660_v42 }
  0xb2   : > { %v418_v20 = vsel %vm335_vm13, %v417_v47, %v416_v0  ;;  %v666_v37 = vshrl.u32 %v1680_v30, %v660_v42  ;;  %v653_v38 = vor.u32 8388608, %v652_v25  ;;  %v658_v13 = vshrl.u32 %v657_v5, 5 }
  0xb3   : > { %v421_v14 = vsel %vm2009_vm0, %v1855_v43, %v418_v20  ;;  %v517_v33 = vand.u32 2147483647, %v516_v50  ;;  %v604_v17 = vshll.u32 %v2090_v29, 30  ;;  %v668_v40 = vshll.u32 %v1680_v30, %v659_v23 }
  0xb4   : > { %1438 = vcosq.f32 %v421_v14  ;;  %v669_v24 = vshrl.u32 %v1681_v32, %v660_v42  ;;  %v671_v45 = vshll.u32 %v1681_v32, %v659_v23  ;;  %v672_v62 = vshrl.u32 %v1682_v34, %v660_v42 }
  0xb5   : > { %1440 = vsinq.f32 %v421_v14  ;;  %v520_v41 = vmul.f32 %v519_v8, %v517_v33  ;;  %v530_v1 = vadd.s32 3, %v526_v19  ;;  %v2101_v48 = vsub.s32 %v601_v63, %v604_v17 }
  0xb6   : > { %v664_v52 = vor.u32 %v663_v31, %v662_v18  ;;  %v674_v53 = vshll.u32 %v1682_v34, %v659_v23  ;;  %v667_v56 = vor.u32 %v666_v37, %v665_v35  ;;  %v673_v57 = vor.u32 %v672_v62, %v671_v45 }
  0xb7   : > { %v521_v54 = vxor.u32 2147483648, %v520_v41  ;;  %v675_v58 = vshrl.u32 %v1683_v44, %v660_v42  ;;  %v607_v59 = vsub.s32 0, %v2101_v48  ;;  %v661_v60 = vshrl.u32 %v1678_v10, %v660_v42 }
  0xb8   : > { %vm677_vm9 = vcmp.lt.s32.totalorder %v658_v13, 1  ;;  %v2107_v61 = vshll.u32 %v653_v38, 8  ;;  %vm428_vm10 = vcmp.lt.s32.totalorder %v2083_v26, 2  ;;  %v670_v0 = vor.u32 %v669_v24, %v668_v40 }
  0xb9   : > { %v522_v16 = vsel %vm439_vm4, %v521_v54, %v520_v41  ;;  %vm678_vm11 = vcmp.lt.s32.totalorder %v658_v13, 2  ;;  %vm680_vm12 = vcmp.lt.s32.totalorder %v658_v13, 4  ;;  %vm425_vm13 = vweird.f32 %v1855_v43 }
  0xba   : > { %v525_v2 = vsel %vm2075_vm8, %v1858_v46, %v522_v16  ;;  %v1244_v7 = vmin.u32 %v607_v59, %v2101_v48  ;;  %v676_v15 = vor.u32 %v675_v58, %v674_v53  ;;  %vm679_vm14 = vcmp.lt.s32.totalorder %v658_v13, 3 }
  0xbb   : > { %1442 = vcosq.f32 %v525_v2  ;;  %v682_v4 = vsel %vm680_vm12, %v670_v0, 2102212464  ;;  %v685_v5 = vsel %vm677_vm9, %v664_v52, %v667_v56  ;;  %v686_v47 = vsel %vm680_vm12, %v673_v57, 920167782 }
  0xbc   : > { %vm429_vm15 = vcmp.eq.s32.totalorder %v2083_v26, 0  ;;  %vm432_vm0 = vcmp.eq.s32.totalorder %v2083_v26, 2  ;;  %1444 = vsinq.f32 %v525_v2  ;;  %v609_v51 = vclz %v1244_v7 }
  0xbd   : > { %v681_v63 = vsel %vm677_vm9, %v661_v60, %v664_v52  ;;  %v683_v23 = vsel %vm679_vm14, %v667_v56, %v682_v4  ;;  %v687_v9 = vsel %vm679_vm14, %v670_v0, %v686_v47  ;;  %v689_v36 = vsel %vm677_vm9, %v667_v56, %v670_v0 }
  0xbe   : > { %v2126_v11 = vand.u32 3, %v530_v1  ;;  %v1245_v25 = vadd.s32 4294967294, %v609_v51  ;;  %v688_v20 = vsel %vm678_vm11, %v685_v5, %v687_v9  ;;  %v690_v12 = vsel %vm680_vm12, %v676_v15, 1326507024 }
  0xbf   : > { %v597_v14 = vadd.s32 %v2049_v3, %v2055_v49  ;;  %v691_v50 = vsel %vm679_vm14, %v673_v57, %v690_v12  ;;  %v2134_v8 = vmul.u32.u64.low %v2107_v61, %v688_v20  ;;  %v2135_v19 = vmul.u32.u64.high %v2107_v61, %v688_v20, %v2134_v8 }
  0xc0   : > { %vm1246_vm1 = vcmp.lt.s32.totalorder %v1245_v25, 0  ;;  %v684_v33 = vsel %vm678_vm11, %v681_v63, %v683_v23  ;;  %v692_v35 = vsel %vm678_vm11, %v689_v36, %v691_v50  ;;  %v752_v1 = vand.u32 2139095040, %v2061_v27 }
  0xc1   : > { %v1439_v42 = vpop.eup %1438  ;;  %v612_v17 = vsel %vm1246_vm1, 0, %v1245_v25  ;;  %v2141_v38 = vmul.u32.u64.low %v2107_v61, %v692_v35  ;;  %v2142_v40 = vmul.u32.u64.high %v2107_v61, %v692_v35, %v2141_v38  ;;  %v700_v62 = vmul.u32 %v2107_v61, %v684_v33 }
  0xc2   : > { %v1441_v18 = vpop.eup %1440  ;;  %v433_v31 = vxor.u32 2147483648, %v1439_v42  ;;  %v613_v49 = vsub.s32 32, %v612_v17  ;;  %v614_v41 = vshll.u32 %v2101_v48, %v612_v17  ;;  %v617_v24 = vsub.s32 4294967266, %v612_v17 }
  0xc3   : > { %v430_v37 = vxor.u32 2147483648, %v1441_v18  ;;  %v703_v13 = vadd.s32 1, %v2135_v19  ;;  %v627_v56 = vsub.s32 4, %v2090_v29  ;;  %vm529_vm2 = vweird.f32 %v1858_v46 }
  0xc4   : > { %v434_v3 = vsel %vm432_vm0, %v433_v31, %v1441_v18  ;;  %v615_v53 = vshrl.u32 %v597_v14, %v613_v49  ;;  %v618_v54 = vadd.s32 127, %v617_v24  ;;  %vm702_vm3 = vc.u32 %v2142_v40, %v2134_v8 }
  0xc5   : > { %v431_v45 = vsel %vm429_vm15, %v1439_v42, %v430_v37  ;;  %v753_v57 = vshrl.u32 %v752_v1, 23  ;;  %v704_v26 = vsel %vm702_vm3, %v703_v13, %v2135_v19  ;;  %vm2164_vm4 = vcmp.le.f32.partialorder %v541_v21, 0.7853982 }
  0xc6   : > { %v435_v52 = vsel %vm428_vm10, %v431_v45, %v434_v3  ;;  %v616_v59 = vor.u32 %v615_v53, %v614_v41  ;;  %v619_v60 = vshll.u32 %v618_v54, 23  ;;  %vm543_vm5 = vcmp.lt.s32.totalorder %v1864_v55, 0 }
  0xc7   : > { %v436_v48 = vsel %vm425_vm13, nan, %v435_v52  ;;  %v705_v43 = vadd.s32 %v704_v26, %v700_v62  ;;  %v1251_v16 = vadd.s32 4294967169, %v753_v57  ;;  %vm536_vm6 = vcmp.eq.s32.totalorder %v2126_v11, 2 }
  0xc8   : > { %v853_v58 = vadd.f32 %v436_v48, %v1853_v39  ;;  %v1443_v0 = vpop.eup %1442  ;;  %v620_v2 = vor.u32 4788187, %v619_v60  ;;  %v623_v39 = vcvt.s32.f32 %v616_v59  ;;  %v628_v7 = vsel %vm543_vm5, %v627_v56, %v2090_v29 }
  0xc9   : > { %v1445_v15 = vpop.eup %1444  ;;  %vm533_vm7 = vcmp.eq.s32.totalorder %v2126_v11, 0  ;;  %v537_v21 = vxor.u32 2147483648, %v1443_v0  ;;  %v706_v4 = vadd.s32 536870912, %v705_v43  ;;  %v759_v5 = vadd.s32 1, %v1251_v16 }
  0xca   : > { %854 = vxpose.xlu0.b32.start [1/5] (short) %v853_v58, 128  ;;  %vm532_vm8 = vcmp.lt.s32.totalorder %v2126_v11, 2  ;;  %v534_v47 = vxor.u32 2147483648, %v1445_v15  ;;  %v621_v51 = vand.u32 2147483647, %v620_v2  ;;  %v749_v63 = vand.u32 2147483647, %v2061_v27 }
  0xcb   : > { %v538_v23 = vsel %vm536_vm6, %v537_v21, %v1445_v15  ;;  %v630_v9 = vsel %vm2164_vm4, 0, %v628_v7  ;;  %v2178_v36 = vshrl.u32 %v706_v4, 30  ;;  %vm760_vm9 = vcmp.gt.s32.totalorder %v759_v5, 0 }
  0xcc   : > { %v535_v29 = vsel %vm533_vm7, %v1443_v0, %v534_v47  ;;  %v624_v25 = vmul.f32 %v623_v39, %v621_v51  ;;  %v761_v20 = vsel %vm760_vm9, %v759_v5, 0  ;;  %v634_v50 = vadd.s32 3, %v630_v9 }
  0xcd   : > { %v539_v12 = vsel %vm532_vm8, %v535_v29, %v538_v23  ;;  %v708_v42 = vshll.u32 %v2178_v36, 30  ;;  %v763_v19 = vand.u32 31, %v761_v20  ;;  %v756_v31 = vand.u32 8388607, %v749_v63 }
  0xce   : > { %v540_v11 = vsel %vm529_vm2, nan, %v539_v12  ;;  %v625_v14 = vxor.u32 2147483648, %v624_v25  ;;  %v762_v35 = vshrl.u32 %v761_v20, 5  ;;  %v2192_v49 = vand.u32 3, %v634_v50 }
  0xcf   : > { %855 = vxpose.xlu0.b32.cont [2/5] (short) %v540_v11, 128  ;;  %v709_v18 = vsub.s32 %v705_v43, %v708_v42  ;;  %v764_v37 = vsub.s32 32, %v763_v19  ;;  %v766_v46 = vshll.u32 %v1678_v10, %v763_v19  ;;  %v769_v3 = vshll.u32 %v1679_v28, %v763_v19 }
  0xd0   : > { %v626_v33 = vsel %vm543_vm5, %v625_v14, %v624_v25  ;;  %v757_v62 = vor.u32 8388608, %v756_v31  ;;  %v772_v13 = vshll.u32 %v1680_v30, %v763_v19  ;;  %v701_v1 = vadd.s32 %v2134_v8, %v2142_v40 }
  0xd1   : > { %v629_v17 = vsel %vm2164_vm4, %v1864_v55, %v626_v33  ;;  %v711_v38 = vsub.s32 0, %v709_v18  ;;  %v767_v41 = vshrl.u32 %v1679_v28, %v764_v37  ;;  %v770_v24 = vshrl.u32 %v1680_v30, %v764_v37 }
  0xd2   : > { %1446 = vcosq.f32 %v629_v17  ;;  %v773_v52 = vshrl.u32 %v1681_v32, %v764_v37  ;;  %v775_v53 = vshll.u32 %v1681_v32, %v763_v19  ;;  %vm781_vm10 = vcmp.lt.s32.totalorder %v762_v35, 1 }
  0xd3   : > { %1448 = vsinq.f32 %v629_v17  ;;  %v1248_v45 = vmin.u32 %v711_v38, %v709_v18  ;;  %v765_v56 = vshrl.u32 %v1678_v10, %v764_v37  ;;  %v768_v48 = vor.u32 %v767_v41, %v766_v46 }
  0xd4   : > { %v771_v28 = vor.u32 %v770_v24, %v769_v3  ;;  %v774_v57 = vor.u32 %v773_v52, %v772_v13  ;;  %v776_v58 = vshrl.u32 %v1682_v34, %v764_v37  ;;  %v778_v59 = vshll.u32 %v1682_v34, %v763_v19 }
  0xd5   : > { %v713_v54 = vclz %v1248_v45  ;;  %v779_v30 = vshrl.u32 %v1683_v44, %v764_v37  ;;  %vm782_vm11 = vcmp.lt.s32.totalorder %v762_v35, 2  ;;  %vm784_vm12 = vcmp.lt.s32.totalorder %v762_v35, 4 }
  0xd6   : > { %v797_v8 = vshll.u32 %v757_v62, 8  ;;  %v777_v40 = vor.u32 %v776_v58, %v775_v53  ;;  %vm783_vm13 = vcmp.lt.s32.totalorder %v762_v35, 3  ;;  %v786_v32 = vsel %vm784_vm12, %v774_v57, 2102212464 }
  0xd7   : > { %v1249_v60 = vadd.s32 4294967294, %v713_v54  ;;  %v780_v26 = vor.u32 %v779_v30, %v778_v59  ;;  %v785_v10 = vsel %vm781_vm10, %v765_v56, %v768_v48  ;;  %v787_v61 = vsel %vm783_vm13, %v771_v28, %v786_v32 }
  0xd8   : > { %v789_v43 = vsel %vm781_vm10, %v768_v48, %v771_v28  ;;  %v790_v0 = vsel %vm784_vm12, %v777_v40, 920167782  ;;  %v793_v34 = vsel %vm781_vm10, %v771_v28, %v774_v57  ;;  %v788_v51 = vsel %vm782_vm11, %v785_v10, %v787_v61 }
  0xd9   : > { %vm1250_vm14 = vcmp.lt.s32.totalorder %v1249_v60, 0  ;;  %v794_v2 = vsel %vm784_vm12, %v780_v26, 1326507024  ;;  %v791_v15 = vsel %vm783_vm13, %v774_v57, %v790_v0  ;;  %vm640_vm15 = vcmp.eq.s32.totalorder %v2192_v49, 2 }
  0xda   : > { %v716_v16 = vsel %vm1250_vm14, 0, %v1249_v60  ;;  %v792_v21 = vsel %vm782_vm11, %v789_v43, %v791_v15  ;;  %v795_v4 = vsel %vm783_vm13, %v777_v40, %v794_v2  ;;  %vm636_vm0 = vcmp.lt.s32.totalorder %v2192_v49, 2 }
  0xdb   : > { %v717_v44 = vsub.s32 32, %v716_v16  ;;  %v718_v39 = vshll.u32 %v709_v18, %v716_v16  ;;  %v721_v7 = vsub.s32 4294967266, %v716_v16  ;;  %v796_v23 = vsel %vm782_vm11, %v793_v34, %v795_v4 }
  0xdc   : > { %v2211_v9 = vmul.u32.u64.low %v797_v8, %v796_v23  ;;  %v2212_v29 = vmul.u32.u64.high %v797_v8, %v796_v23, %v2211_v9  ;;  %v2214_v25 = vmul.u32.u64.low %v797_v8, %v792_v21  ;;  %v2215_v20 = vmul.u32.u64.high %v797_v8, %v792_v21, %v2214_v25 }
  0xdd   : > { %v719_v5 = vshrl.u32 %v701_v1, %v717_v44  ;;  %v722_v47 = vadd.s32 127, %v721_v7  ;;  %vm637_vm1 = vcmp.eq.s32.totalorder %v2192_v49, 0  ;;  %v804_v33 = vmul.u32 %v797_v8, %v788_v51 }
  0xde   : > { %vm633_vm2 = vweird.f32 %v1864_v55  ;;  %vm806_vm3 = vc.u32 %v2212_v29, %v2214_v25  ;;  %v807_v37 = vadd.s32 1, %v2215_v20  ;;  %vm647_vm4 = vcmp.lt.s32.totalorder %v1961_v6, 0 }
  0xdf   : > { %v1447_v12 = vpop.eup %1446  ;;  %v720_v42 = vor.u32 %v719_v5, %v718_v39  ;;  %v723_v11 = vshll.u32 %v722_v47, 23  ;;  %v731_v45 = vsub.s32 4, %v2178_v36  ;;  %vm646_vm5 = vcmp.le.f32.partialorder %v645_v22, 0.7853982 }
  0xe0   : > { %v1449_v14 = vpop.eup %1448  ;;  %v641_v50 = vxor.u32 2147483648, %v1447_v12  ;;  %v808_v3 = vsel %vm806_vm3, %v807_v37, %v2215_v20  ;;  %v805_v22 = vadd.s32 %v2214_v25, %v2212_v29  ;;  %vm737_vm10 = vweird.f32 %v1961_v6 }
  0xe1   : > { %v638_v19 = vxor.u32 2147483648, %v1449_v14  ;;  %v724_v18 = vor.u32 4788187, %v723_v11  ;;  %v727_v31 = vcvt.s32.f32 %v720_v42  ;;  %v809_v49 = vadd.s32 %v808_v3, %v804_v33 }
  0xe2   : > { %v642_v35 = vsel %vm640_vm15, %v641_v50, %v1449_v14  ;;  %v732_v52 = vsel %vm647_vm4, %v731_v45, %v2178_v36  ;;  %vm751_vm11 = vcmp.lt.s32.totalorder %v2061_v27, 0  ;;  %vm750_vm12 = vcmp.le.f32.partialorder %v749_v63, 0.7853982 }
  0xe3   : > { %v639_v17 = vsel %vm637_vm1, %v1447_v12, %v638_v19  ;;  %v725_v38 = vand.u32 2147483647, %v724_v18  ;;  %v810_v62 = vadd.s32 536870912, %v809_v49  ;;  %v734_v56 = vsel %vm646_vm5, 0, %v732_v52 }
  0xe4   : > { %v643_v46 = vsel %vm636_vm0, %v639_v17, %v642_v35  ;;  %v738_v57 = vadd.s32 3, %v734_v56  ;;  %vm841_vm0 = vweird.f32 %v2061_v27  ;;  %vm886_vm1 = vcmask 318464  }
  0xe5   : > { %v644_v41 = vsel %vm633_vm2, nan, %v643_v46  ;;  %v728_v24 = vmul.f32 %v727_v31, %v725_v38  ;;  %v811_v1 = vshrl.u32 %v810_v62, 30 }
  0xe6   : > { %856 = vxpose.xlu0.b32.cont [3/5] (short) %v644_v41, 128  ;;  %v739_v30 = vand.u32 3, %v738_v57 }
  0xe7   : > { %v729_v55 = vxor.u32 2147483648, %v728_v24  ;;  %v812_v54 = vshll.u32 %v811_v1, 30  ;;  %v835_v51 = vsub.s32 4, %v811_v1 }
  0xe8   : > { %vm741_vm7 = vcmp.eq.s32.totalorder %v739_v30, 0  ;;  %vm744_vm8 = vcmp.eq.s32.totalorder %v739_v30, 2  ;;  %vm740_vm9 = vcmp.lt.s32.totalorder %v739_v30, 2 }
  0xe9   : > { %v730_v13 = vsel %vm647_vm4, %v729_v55, %v728_v24  ;;  %v813_v48 = vsub.s32 %v809_v49, %v812_v54  ;;  %v836_v9 = vsel %vm751_vm11, %v835_v51, %v811_v1 }
  0xea   : > { %v733_v53 = vsel %vm646_vm5, %v1961_v6, %v730_v13  ;;  %v838_v25 = vsel %vm750_vm12, 0, %v836_v9 }
  0xeb   : > { %1450 = vcosq.f32 %v733_v53  ;;  %v815_v28 = vsub.s32 0, %v813_v48  ;;  %v842_v20 = vadd.s32 3, %v838_v25 }
  0xec   : > { %1452 = vsinq.f32 %v733_v53 }
  0xed   : > { %v1252_v58 = vmin.u32 %v815_v28, %v813_v48  ;;  %v843_v12 = vand.u32 3, %v842_v20 }
  0xef   : > { %v817_v59 = vclz %v1252_v58  ;;  %vm848_vm13 = vcmp.eq.s32.totalorder %v843_v12, 2  ;;  %vm845_vm14 = vcmp.eq.s32.totalorder %v843_v12, 0  ;;  %vm844_vm15 = vcmp.lt.s32.totalorder %v843_v12, 2 }
  0xf1   : > { %v1253_v60 = vadd.s32 4294967294, %v817_v59 }
  0xf3   : > { %vm1254_vm6 = vcmp.lt.s32.totalorder %v1253_v60, 0 }
  0xf4   : > { %v820_v36 = vsel %vm1254_vm6, 0, %v1253_v60 }
  0xf5   : > { %v821_v32 = vsub.s32 32, %v820_v36  ;;  %v822_v10 = vshll.u32 %v813_v48, %v820_v36  ;;  %v825_v61 = vsub.s32 4294967266, %v820_v36 }
  0xf7   : > { %v823_v0 = vshrl.u32 %v805_v22, %v821_v32  ;;  %v826_v34 = vadd.s32 127, %v825_v61 }
  0xf8   : > { %v1451_v8 = vpop.eup %1450 }
  0xf9   : > { %v1453_v40 = vpop.eup %1452  ;;  %v745_v26 = vxor.u32 2147483648, %v1451_v8  ;;  %v824_v39 = vor.u32 %v823_v0, %v822_v10  ;;  %v827_v7 = vshll.u32 %v826_v34, 23 }
  0xfa   : > { %v742_v43 = vxor.u32 2147483648, %v1453_v40 }
  0xfb   : > { %v746_v16 = vsel %vm744_vm8, %v745_v26, %v1453_v40  ;;  %v828_v21 = vor.u32 4788187, %v827_v7  ;;  %v831_v4 = vcvt.s32.f32 %v824_v39 }
  0xfc   : > { %v743_v2 = vsel %vm741_vm7, %v1451_v8, %v742_v43 }
  0xfd   : > { %v747_v44 = vsel %vm740_vm9, %v743_v2, %v746_v16  ;;  %v829_v5 = vand.u32 2147483647, %v828_v21 }
  0xfe   : > { %v748_v15 = vsel %vm737_vm10, nan, %v747_v44 }
  0xff   : > { %857 = vxpose.xlu0.b32.cont [4/5] (short) %v748_v15, 128  ;;  %v832_v47 = vmul.f32 %v831_v4, %v829_v5 }
 0x101   : > { %v833_v6 = vxor.u32 2147483648, %v832_v47 }
 0x103   : > { %v834_v23 = vsel %vm751_vm11, %v833_v6, %v832_v47 }
 0x104   : > { %v837_v29 = vsel %vm750_vm12, %v2061_v27, %v834_v23 }
 0x105   : > { %1454 = vcosq.f32 %v837_v29 }
 0x106   : > { %1456 = vsinq.f32 %v837_v29 }
 0x112   : > { %v1455_v42 = vpop.eup %1454 }
 0x113   : > { %v1457_v11 = vpop.eup %1456  ;;  %v849_v14 = vxor.u32 2147483648, %v1455_v42 }
 0x114   : > { %v846_v50 = vxor.u32 2147483648, %v1457_v11 }
 0x115   : > { %v850_v63 = vsel %vm848_vm13, %v849_v14, %v1457_v11 }
 0x116   : > { %v847_v19 = vsel %vm845_vm14, %v1455_v42, %v846_v50 }
 0x117   : > { %v851_v18 = vsel %vm844_vm15, %v847_v19, %v850_v63 }
 0x118   : > { %v852_v31 = vsel %vm841_vm0, nan, %v851_v18 }
 0x119   : > { %858 = vxpose.xlu0.b32.end [5/5] (short) %v852_v31, 128 }
 0x185   : > { %v870_v33 = vpop.trf.xlu0 }
 0x186   : > { %887 = vst.msk [vmem:[%s2238_s30] sm:$0xff] %vm886_vm1, %v870_v33 }
 0x189   : > { %v871_v27 = vpop.trf.xlu0 }
 0x18a   : > { %888 = vst.msk [vmem:[%s2238_s30 + $0x8] sm:$0xff] %vm886_vm1, %v871_v27 }
 0x18d   : > { %v872_v35 = vpop.trf.xlu0 }
 0x18e   : > { %889 = vst.msk [vmem:[%s2238_s30 + $0x10] sm:$0xff] %vm886_vm1, %v872_v35 }
 0x191   : > { %v873_v37 = vpop.trf.xlu0 }
 0x192   : > { %890 = vst.msk [vmem:[%s2238_s30 + $0x18] sm:$0xff] %vm886_vm1, %v873_v37 }
 0x195   : > { %v874_v17 = vpop.trf.xlu0 }
 0x196   : > { %891 = vst.msk [vmem:[%s2238_s30 + $0x20] sm:$0xff] %vm886_vm1, %v874_v17 }
 0x199   : > { %v875_v38 = vpop.trf.xlu0 }
 0x19a   : > { %892 = vst.msk [vmem:[%s2238_s30 + $0x28] sm:$0xff] %vm886_vm1, %v875_v38 }
 0x19d   : > { %v876_v46 = vpop.trf.xlu0 }
 0x19e   : > { %893 = vst.msk [vmem:[%s2238_s30 + $0x30] sm:$0xff] %vm886_vm1, %v876_v46 }
 0x1a1   : > { %v877_v3 = vpop.trf.xlu0 }
 0x1a2   : > { %894 = vst.msk [vmem:[%s2238_s30 + $0x38] sm:$0xff] %vm886_vm1, %v877_v3 }
 0x1a5   : > { %v878_v41 = vpop.trf.xlu0 }
 0x1a6   : > { %895 = vst.msk [vmem:[%s2238_s30 + $0x40] sm:$0xff] %vm886_vm1, %v878_v41 }
 0x1a9   : > { %v879_v24 = vpop.trf.xlu0 }
 0x1aa   : > { %896 = vst.msk [vmem:[%s2238_s30 + $0x48] sm:$0xff] %vm886_vm1, %v879_v24 }
 0x1ad   : > { %v880_v49 = vpop.trf.xlu0 }
 0x1ae   : > { %897 = vst.msk [vmem:[%s2238_s30 + $0x50] sm:$0xff] %vm886_vm1, %v880_v49 }
 0x1b1   : > { %v881_v45 = vpop.trf.xlu0 }
 0x1b2   : > { %898 = vst.msk [vmem:[%s2238_s30 + $0x58] sm:$0xff] %vm886_vm1, %v881_v45 }
 0x1b5   : > { %v882_v55 = vpop.trf.xlu0 }
 0x1b6   : > { %899 = vst.msk [vmem:[%s2238_s30 + $0x60] sm:$0xff] %vm886_vm1, %v882_v55 }
 0x1b9   : > { %v883_v62 = vpop.trf.xlu0 }
 0x1ba   : > { %900 = vst.msk [vmem:[%s2238_s30 + $0x68] sm:$0xff] %vm886_vm1, %v883_v62 }
 0x1bd   : > { %v884_v13 = vpop.trf.xlu0 }
 0x1be   : > { %901 = vst.msk [vmem:[%s2238_s30 + $0x70] sm:$0xff] %vm886_vm1, %v884_v13  ;;  %909 = sbr.rel (!%p2401_p6) target bundleno = 492 (0x1ec), region = 56 }
 0x1c1   : > { %v885_v1 = vpop.trf.xlu0 }
 0x1c2   : > { %902 = vst.msk [vmem:[%s2238_s30 + $0x78] sm:$0xff] %vm886_vm1, %v885_v1 }
 0x1c3   : > { %s2410_s7 = smov (!%p912_p0, %s911_s7), 16 }
 0x1c4   : > { %s1257_s10 = sshll.u32 %s2410_s7, 7 }
 0x1c5   : > { %p1260_p8 = scmp.eq.s32.totalorder %s1257_s10, 0 }
 0x1c6   : > { %s2285_s23 = sshrl.u32 (!%p1260_p8), %s2410_s7, 4 }
 0x1c7   : > { %920 = sbr.rel (%p1260_p8) target bundleno = 492 (0x1ec), region = 60  ;;  %p1261_p12 = scmp.le.s32.totalorder (!%p1260_p8), %s2285_s23, 0 }
 0x1cc   : > { %1147 = sbr.rel (%p1261_p12) target bundleno = 475 (0x1db), region = 147  ;;  %s2402_s19 = smov (!%p1261_p12), %s2279_s18 }
 0x1cd   : > { %s2403_s11 = smov (!%p1261_p12), %s2238_s30  ;;  %s2294_s12 = smov (!%p1261_p12), 0  }
 0x1ce   : > { %s2296_s13 = smov (!%p1261_p12), 0  }
 0x1d1 LB: >> { %v1013_v52 = vld [vmem:[%s1646_s11] sm:$0xff]  ;;  %v1015_v53 = vld [vmem:[%s1646_s11 + $0x8] sm:$0xff]  ;;  %v1017_v54 = vld [vmem:[%s1646_s11 + $0x10] sm:$0xff]  ;;  %s1045_s15 = sadd.s32 1, %s1650_s12  ;;  %s1007_s13 = sadd.s32 1, %s1654_s13   ;;  %s1654_s13 = sphi %s2296_s13, %s1007_s13   ;;  %s1650_s12 = sphi %s2294_s12, %s2404_s12   ;;  %s1646_s11 = sphi %s2403_s11, %s1050_s11   ;;  %s1642_s19 = sphi %s2402_s19, %s1051_s19  }
 0x1d2   : >> { %1014 = vst [vmem:[%s1642_s19] sm:$0xff] %v1013_v52  ;;  %1016 = vst [vmem:[%s1642_s19 + $0x8] sm:$0xff] %v1015_v53  ;;  %v1019_v56 = vld [vmem:[%s1646_s11 + $0x18] sm:$0xff]  ;;  %v1021_v48 = vld [vmem:[%s1646_s11 + $0x20] sm:$0xff]  ;;  %p1046_p3 = scmp.ge.s32.totalorder %s1045_s15, %s2285_s23  ;;  %p1006_p4 = scmp.ge.s32.totalorder %s1007_s13, %s2285_s23 }
 0x1d3   : >> { %1018 = vst [vmem:[%s1642_s19 + $0x10] sm:$0xff] %v1017_v54  ;;  %v1023_v28 = vld [vmem:[%s1646_s11 + $0x28] sm:$0xff]  ;;  %1020 = vst [vmem:[%s1642_s19 + $0x18] sm:$0xff] %v1019_v56  ;;  %v1025_v57 = vld [vmem:[%s1646_s11 + $0x30] sm:$0xff] }
 0x1d4   : >> { %1022 = vst [vmem:[%s1642_s19 + $0x20] sm:$0xff] %v1021_v48  ;;  %1024 = vst [vmem:[%s1642_s19 + $0x28] sm:$0xff] %v1023_v28  ;;  %v1027_v58 = vld [vmem:[%s1646_s11 + $0x38] sm:$0xff]  ;;  %v1029_v59 = vld [vmem:[%s1646_s11 + $0x40] sm:$0xff]  ;;  %s2412_s15 = smov (%p1046_p3, %s1045_s15), 0 }
 0x1d5   : >> { %1026 = vst [vmem:[%s1642_s19 + $0x30] sm:$0xff] %v1025_v57  ;;  %1028 = vst [vmem:[%s1642_s19 + $0x38] sm:$0xff] %v1027_v58  ;;  %v1031_v30 = vld [vmem:[%s1646_s11 + $0x48] sm:$0xff]  ;;  %v1033_v60 = vld [vmem:[%s1646_s11 + $0x50] sm:$0xff]  ;;  %s1262_s22 = sshll.u32 %s2412_s15, 7  ;;  %s2404_s12 = smov %s2412_s15 }
 0x1d6   : >> { %1030 = vst [vmem:[%s1642_s19 + $0x40] sm:$0xff] %v1029_v59  ;;  %v1035_v22 = vld [vmem:[%s1646_s11 + $0x58] sm:$0xff]  ;;  %1032 = vst [vmem:[%s1642_s19 + $0x48] sm:$0xff] %v1031_v30  ;;  %v1037_v8 = vld [vmem:[%s1646_s11 + $0x60] sm:$0xff]  ;;  %1009 = sbr.rel (!%p1006_p4) target bundleno = 465 (0x1d1), region = 153 }
 0x1d7   : >> { %1034 = vst [vmem:[%s1642_s19 + $0x50] sm:$0xff] %v1033_v60  ;;  %1036 = vst [vmem:[%s1642_s19 + $0x58] sm:$0xff] %v1035_v22  ;;  %v1039_v36 = vld [vmem:[%s1646_s11 + $0x68] sm:$0xff]  ;;  %v1041_v40 = vld [vmem:[%s1646_s11 + $0x70] sm:$0xff] }
 0x1d8   : >> { %1038 = vst [vmem:[%s1642_s19 + $0x60] sm:$0xff] %v1037_v8  ;;  %1040 = vst [vmem:[%s1642_s19 + $0x68] sm:$0xff] %v1039_v36  ;;  %v1043_v26 = vld [vmem:[%s1646_s11 + $0x78] sm:$0xff]  ;;  %s1050_s11 = scalar_lea.vmem %s2238_s30, %s1262_s22 [#allocation9]  }
 0x1d9   : >> { %1042 = vst [vmem:[%s1642_s19 + $0x70] sm:$0xff] %v1041_v40  ;;  %1044 = vst [vmem:[%s1642_s19 + $0x78] sm:$0xff] %v1043_v26  ;;  %s1051_s19 = scalar_lea.vmem %s2279_s18, %s1262_s22  }
 0x1db PF: > { %s2354_s25 = sand.u32 15, %s2410_s7   ;;  %s1273_s26 = sshll.u32 %s2285_s23, 7 }
 0x1dc   : > { %s1056_s27 = scalar_lea.vmem %s2238_s30, %s1273_s26 [#allocation9]   ;;  %s1058_s21 = scalar_lea.vmem %s2279_s18, %s1273_s26  }
 0x1dd   : > { %p1267_p7 = scmp.le.s32.totalorder %s2354_s25, 0 }
 0x1de   : > { %s1656_s28 = smov (!%p1267_p7), %s1058_s21   ;;  %s1660_s29 = smov (!%p1267_p7), %s1056_s27  }
 0x1df   : > { %1161 = sbr.rel (%p1267_p7) target bundleno = 492 (0x1ec), region = 158  ;;  %s1664_s20 = smov (!%p1267_p7), 0  }
 0x1e0   : > { %s1668_s5 = smov (!%p1267_p7), 0  }
 0x1e4 LB: >> { %v1068_v32 = vld [vmem:[%s1662_s29] sm:$0xff]  ;;  %s1070_s6 = sadd.s32 1, %s1666_s20  ;;  %s1062_s5 = sadd.s32 1, %s1670_s5   ;;  %s1670_s5 = sphi %s1668_s5, %s1062_s5   ;;  %s1666_s20 = sphi %s1664_s20, %s1665_s20   ;;  %s1662_s29 = sphi %s1660_s29, %s1075_s29   ;;  %s1658_s28 = sphi %s1656_s28, %s1076_s28  }
 0x1e5   : >> { %1069 = vst [vmem:[%s1658_s28] sm:$0xff] %v1068_v32  ;;  %p1071_p2 = scmp.ge.s32.totalorder %s1070_s6, %s2354_s25  ;;  %p1061_p10 = scmp.ge.s32.totalorder %s1062_s5, %s2354_s25 }
 0x1e7   : >> { %s2414_s6 = smov (%p1071_p2, %s1070_s6), 0  ;;  %1064 = sbr.rel (!%p1061_p10) target bundleno = 484 (0x1e4), region = 164 }
 0x1e8   : >> { %s1268_s30 = sshll.u32 %s2414_s6, 3  ;;  %s1665_s20 = smov %s2414_s6  }
 0x1e9   : >> { %s1075_s29 = scalar_lea.vmem %s1056_s27, %s1268_s30 [#allocation9]   ;;  %s1076_s28 = scalar_lea.vmem %s1058_s21, %s1268_s30  }
 0x1ec PF: > { %p16_p9 = scmp.ge.s32.totalorder %s1780_s14, 4   ;;  %s2405_s15 = smov %s1630_s16 }
 0x1ed   : > { %s2406_s16 = smov %s1634_s17  ;;  %s2407_s17 = smov %s1796_s24 }
 0x1ee   : > { %s2408_s18 = smov %s1780_s14  ;;  %18 = sbr.rel (!%p16_p9) target bundleno = 5 (0x5), region = 175 }
 0x1f3   :  { %1092 = vsyncpa [#allocation3], 1 }
 0x1f4   :  { %1094 = vsyncpa [#allocation3 + $0x1], 1 }
 0x1f5   :  { %1095 = vsyncpa [#allocation5], 1 }
 0x1f6   :  { %1096 = vsyncpa [#allocation8], 1 }
 0x1f7   :  { %1098 = vsyncpa [#allocation8 + $0x1], 1 }

</bundles_post_ra>
